<compile_context>
chip_gen: v7x
topology: tpu7x:2x2x1
jax: 0.10.0
libtpu: 0.0.40
codegen_flags: <defaults>
</compile_context>

<pallas_src>
import functools

import jax
import jax.numpy as jnp
from jax import lax
from jax.experimental import pallas as pl
from jax.experimental.pallas import tpu as pltpu

EPS = 1e-5           # torch.nn.LayerNorm default eps
MASK_VALUE = -1e30   # additive mask for padded keys


def _round_up(x, m):
    return ((x + m - 1) // m) * m


def _erf(x):
    # Abramowitz & Stegun 7.1.26 polynomial (max abs err ~1.5e-7), f32.
    a1, a2, a3, a4, a5 = (0.254829592, -0.284496736, 1.421413741,
                          -1.453152027, 1.061405429)
    p = 0.3275911
    s = jnp.sign(x)
    ax = jnp.abs(x)
    t = pl.reciprocal(1.0 + p * ax, approx=True)     # EUP slot (free vs VALU)
    poly = ((((a5 * t + a4) * t + a3) * t + a2) * t + a1) * t
    return s * (1.0 - poly * jnp.exp(-ax * ax))


def _gelu_exact(x):
    # nn.GELU() default is the exact (erf-based) GELU; x is f32 here.
    # TODO(synk): on v6e/v7x the polynomial could run in bf16 (bf16 VPU) for
    # ~2x elementwise throughput; kept in f32 for v5e portability / parity.
    return 0.5 * x * (1.0 + _erf(x * 0.7071067811865476))


def _layernorm_f32(x, w, b):
    xf = x.astype(jnp.float32)
    mu = jnp.mean(xf, axis=-1, keepdims=True)
    var = jnp.mean((xf - mu) ** 2, axis=-1, keepdims=True)
    return (xf - mu) * lax.rsqrt(var + EPS) * w + b


# ------------------------ feature / hardware probes -------------------------

def _vmem_capacity_bytes():
    try:
        return int(pltpu.get_tpu_info().vmem_capacity_bytes)
    except Exception:
        return 64 * 1024 * 1024      # conservative default (v7x per-core VMEM)


_BUFFERED1_OK = None


def _probe_buffered_kernel(x_ref, o_ref):
    o_ref[...] = x_ref[...] + 1.0


def _single_buffer_supported():
    """True iff pipeline_mode=pl.Buffered(1) compiles, runs and is correct."""
    global _BUFFERED1_OK
    if _BUFFERED1_OK is None:
        try:
            f = pl.pallas_call(
                _probe_buffered_kernel,
                grid=(2,),
                in_specs=[pl.BlockSpec((8, 128), lambda i: (0, 0),
                                       pipeline_mode=pl.Buffered(1))],
                out_specs=pl.BlockSpec((8, 128), lambda i: (0, 0)),
                out_shape=jax.ShapeDtypeStruct((8, 128), jnp.float32),
            )
            r = jax.block_until_ready(f(jnp.zeros((8, 128), jnp.float32)))
            _BUFFERED1_OK = bool(jnp.allclose(r, 1.0))
        except Exception:
            _BUFFERED1_OK = False
    return _BUFFERED1_OK


# --------------------- stage 1: LN1 + fused QKV projection ------------------

def _ln_qkv_kernel(x_ref, ln_w_ref, ln_b_ref, wqkv_ref, bqkv_ref,
                   q_ref, k_ref, v_ref):
    ln = _layernorm_f32(x_ref[...], ln_w_ref[...], ln_b_ref[...])
    ln_c = ln.astype(wqkv_ref.dtype)                      # bf16 MXU operand
    # One long (tq, D) x (D, 3D) MXU chain instead of three separate matmuls.
    qkv = jnp.dot(ln_c, wqkv_ref[...],
                  preferred_element_type=jnp.float32) + bqkv_ref[...]
    d = q_ref.shape[-1]
    q_ref[...] = qkv[:, :d].astype(q_ref.dtype)           # scale pre-folded in Wq
    k_ref[...] = qkv[:, d:2 * d].astype(k_ref.dtype)
    v_ref[...] = qkv[:, 2 * d:].astype(v_ref.dtype)


# ------------- stage 2: full-row attention, plain softmax per q tile --------

def _attn_kernel(q_ref, k_ref, v_ref, o_ref, *, head_block, hd, t_valid,
                 need_mask):
    q = q_ref[...]                       # (tq, head_block*hd) bf16 (pre-scaled)
    k = k_ref[...]                       # (Tkv, head_block*hd) bf16, full row
    v = v_ref[...]

    if need_mask:
        key_pos = lax.broadcasted_iota(jnp.int32, (1, k.shape[0]), 1)
        invalid = key_pos >= t_valid     # padded keys (only exists when Tp != T)

    outs = []
    for g in range(head_block):          # small static unroll (1..4 heads)
        sl = slice(g * hd, (g + 1) * hd)
        s = lax.dot_general(q[:, sl], k[:, sl], (((1,), (1,)), ((), ())),
                            preferred_element_type=jnp.float32)   # (tq, Tkv) f32
        if need_mask:
            s = jnp.where(invalid, MASK_VALUE, s)
        m = jnp.max(s, axis=-1, keepdims=True)
        p = jnp.exp(s - m)               # masked keys underflow to exactly 0
        l = jnp.sum(p, axis=-1, keepdims=True)
        o_g = jnp.dot(p.astype(v.dtype), v[:, sl],
                      preferred_element_type=jnp.float32)
        outs.append(o_g / l)             # exact divide, once per q tile per head
    o = outs[0] if head_block == 1 else jnp.concatenate(outs, axis=-1)
    o_ref[...] = o.astype(o_ref.dtype)   # lane-dense (tq, head_block*hd) store


# -------- stage 3: Wo matmul + residual + LN2 + tiled MLP (f32 acc) ----------

def _proj_mlp_kernel(x_ref, attn_ref, wo_ref, bo_ref, ln_w_ref, ln_b_ref,
                     w1_ref, b1_ref, w2_ref, b2_ref, o_ref, ln2_s, acc_s):
    c = pl.program_id(2)

    @pl.when(c == 0)
    def _():
        # Single concatenated (tq, D) x (D, D) output projection.
        a = jnp.dot(attn_ref[...], wo_ref[...],
                    preferred_element_type=jnp.float32) + bo_ref[...]
        xa = x_ref[...].astype(jnp.float32) + a           # residual, f32
        ln2_s[...] = _layernorm_f32(xa, ln_w_ref[...],
                                    ln_b_ref[...]).astype(ln2_s.dtype)
        acc_s[...] = xa                                   # f32 accumulator

    # one n_mlp reduction chunk per grid step
    h1 = jnp.dot(ln2_s[...], w1_ref[...],
                 preferred_element_type=jnp.float32) + b1_ref[...]
    g = _gelu_exact(h1).astype(w2_ref.dtype)              # bf16 matmul operand
    acc_s[...] += jnp.dot(g, w2_ref[...], preferred_element_type=jnp.float32)

    @pl.when(c == pl.num_programs(2) - 1)
    def _():
        o_ref[...] = (acc_s[...] + b2_ref[...]).astype(o_ref.dtype)


# ------------------------------- wrapper ------------------------------------

def residual_attention_block(x, params, n_head, *, seq_tile=256, mlp_tile=None,
                             head_block=None, compute_dtype=jnp.bfloat16):
    B, T, D = x.shape
    assert D % n_head == 0
    hd = D // n_head
    n_mlp = 4 * D
    assert n_mlp % 128 == 0
    f32 = jnp.float32
    cdt = compute_dtype

    # generation-aware VMEM budget: ~100 MiB on v5e/v6e (128 MiB VMEM),
    # ~50 MiB on v7x (64 MiB VMEM).
    vmem_cap = _vmem_capacity_bytes()
    vmem_limit = int(min(vmem_cap * 0.8, 112 * 1024 * 1024))

    # ----- tile sizes -----
    seq_tile = min(seq_tile, _round_up(T, 8))
    assert seq_tile % 8 == 0
    if seq_tile >= 128:
        assert seq_tile % 128 == 0, "production seq tiles must be lane-aligned"
    Tp = _round_up(T, seq_tile)
    n_seq = Tp // seq_tile

    if mlp_tile is None:
        mlp_tile = 2048 if vmem_cap >= 96 * 1024 * 1024 else 1024
    mlp_tile = max(128, min(mlp_tile, n_mlp))
    mlp_tile = (mlp_tile // 128) * 128
    while n_mlp % mlp_tile:
        mlp_tile -= 128
    n_mchunks = n_mlp // mlp_tile

    # head blocking: lane-dense (multiple-of-128-wide) head groups when possible
    if head_block is None:
        if (hd <= 128 and 128 % hd == 0 and (128 // hd) <= n_head
                and n_head % (128 // hd) == 0):
            head_block = 128 // hd            # e.g. hd=64 -> head pairs (128 lanes)
        else:
            head_block = n_head               # full-D block (always legal)
    assert n_head % head_block == 0
    dh_blk = head_block * hd
    assert dh_blk % 128 == 0 or dh_blk == D
    n_hblk = n_head // head_block

    # ----- parameters: bf16 matmul weights, f32 biases / LN params -----
    # hd**-0.25 on q and hd**-0.25 on k are folded into Wq/bq once (hd**-0.5).
    q_scale = float(hd) ** -0.5
    wqkv = jnp.concatenate([params["wq"].astype(f32) * q_scale,
                            params["wk"].astype(f32),
                            params["wv"].astype(f32)], axis=1).astype(cdt)
    bqkv = jnp.concatenate([params["bq"].astype(f32) * q_scale,
                            jnp.zeros((1, D), f32),        # key proj has no bias
                            params["bv"].astype(f32)], axis=1)
    wo = params["wo"].astype(cdt)
    w1 = params["w1"].astype(cdt)
    w2 = params["w2"].astype(cdt)
    bo = params["bo"].astype(f32)
    b1 = params["b1"].astype(f32)
    b2 = params["b2"].astype(f32)
    attn_ln_w = params["attn_ln_w"].astype(f32)
    attn_ln_b = params["attn_ln_b"].astype(f32)
    mlp_ln_w = params["mlp_ln_w"].astype(f32)
    mlp_ln_b = params["mlp_ln_b"].astype(f32)

    # pad T to a multiple of the sequence tile; padded keys masked in stage 2
    x_p = jnp.pad(x, ((0, 0), (0, Tp - T), (0, 0))) if Tp != T else x

    single_buf = _single_buffer_supported()

    def const_spec(shape, index_map):
        # constant-index weights/biases never get re-fetched: single-buffer them
        # (halves their VMEM) when the installed Pallas supports Buffered(1).
        if single_buf:
            return pl.BlockSpec(shape, index_map, pipeline_mode=pl.Buffered(1))
        return pl.BlockSpec(shape, index_map)

    def cparams(sem):
        return pltpu.CompilerParams(dimension_semantics=sem,
                                    vmem_limit_bytes=vmem_limit)

    # ---------------- stage 1: LN1 + fused QKV projection ----------------
    seq_spec1 = pl.BlockSpec((None, seq_tile, D), lambda b, i: (b, i, 0))
    q, k, v = pl.pallas_call(
        _ln_qkv_kernel,
        grid=(B, n_seq),
        in_specs=[seq_spec1,
                  const_spec((1, D), lambda b, i: (0, 0)),        # attn_ln w
                  const_spec((1, D), lambda b, i: (0, 0)),        # attn_ln b
                  const_spec((D, 3 * D), lambda b, i: (0, 0)),    # fused Wqkv
                  const_spec((1, 3 * D), lambda b, i: (0, 0))],   # fused bqkv
        out_specs=(seq_spec1, seq_spec1, seq_spec1),
        out_shape=(jax.ShapeDtypeStruct((B, Tp, D), cdt),
                   jax.ShapeDtypeStruct((B, Tp, D), cdt),
                   jax.ShapeDtypeStruct((B, Tp, D), cdt)),
        compiler_params=cparams(("parallel", "parallel")),
    )(x_p, attn_ln_w, attn_ln_b, wqkv, bqkv)

    # ---------------- stage 2: attention (full KV row per step) --------------
    # Q/K/V stay in (B, Tp, D); head blocks are lane slices -> no HBM transposes
    # and lane-dense output stores directly into the (B, Tp, D) layout.
    # TODO(synk): add an online-softmax fallback with kv tiling for sequences
    # whose full (Tp, dh_blk) K/V rows + f32 scores would not fit in VMEM
    # (never the case for Whisper's n_ctx=1500).
    q_spec = pl.BlockSpec((None, seq_tile, dh_blk), lambda b, h, i: (b, i, h))
    kv_spec = pl.BlockSpec((None, Tp, dh_blk), lambda b, h, i: (b, 0, h))
    attn = pl.pallas_call(
        functools.partial(_attn_kernel, head_block=head_block, hd=hd,
                          t_valid=T, need_mask=(Tp != T)),
        grid=(B, n_hblk, n_seq),
        in_specs=[q_spec, kv_spec, kv_spec],
        out_specs=q_spec,
        out_shape=jax.ShapeDtypeStruct((B, Tp, D), cdt),
        compiler_params=cparams(("parallel", "parallel", "parallel")),
    )(q, k, v)

    # -------- stage 3: output projection + residual + LN2 + tiled MLP --------
    # TODO(synk): optionally fold the Wo projection into stage 2's epilogue to
    # remove the pre-projection attention intermediate's HBM round trip.
    seq_spec3 = pl.BlockSpec((None, seq_tile, D), lambda b, i, c: (b, i, 0))
    out = pl.pallas_call(
        _proj_mlp_kernel,
        grid=(B, n_seq, n_mchunks),
        in_specs=[seq_spec3,                                     # x (residual)
                  seq_spec3,                                     # attention (pre-Wo)
                  const_spec((D, D), lambda b, i, c: (0, 0)),    # Wo
                  const_spec((1, D), lambda b, i, c: (0, 0)),    # bo
                  const_spec((1, D), lambda b, i, c: (0, 0)),    # mlp_ln w
                  const_spec((1, D), lambda b, i, c: (0, 0)),    # mlp_ln b
                  pl.BlockSpec((D, mlp_tile), lambda b, i, c: (0, c)),   # W1 chunk
                  pl.BlockSpec((1, mlp_tile), lambda b, i, c: (0, c)),   # b1 chunk
                  pl.BlockSpec((mlp_tile, D), lambda b, i, c: (c, 0)),   # W2 chunk
                  const_spec((1, D), lambda b, i, c: (0, 0))],   # b2
        out_specs=seq_spec3,
        out_shape=jax.ShapeDtypeStruct((B, Tp, D), x.dtype),
        scratch_shapes=[pltpu.VMEM((seq_tile, D), cdt),          # LN2 output
                        pltpu.VMEM((seq_tile, D), f32)],         # f32 accumulator
        compiler_params=cparams(("parallel", "parallel", "arbitrary")),
    )(x_p, attn, wo, bo, mlp_ln_w, mlp_ln_b, w1, b1, w2, b2)

    return out[:, :T, :] if Tp != T else out


# ------------------------------ reference -----------------------------------

def reference(x, p, n_head):
    """Pure-JAX (f32) reference mirroring the PyTorch forward semantics."""
    def ln(t, w, b):
        tf = t.astype(jnp.float32)
        mu = tf.mean(-1, keepdims=True)
        var = ((tf - mu) ** 2).mean(-1, keepdims=True)
        return ((tf - mu) / jnp.sqrt(var + EPS)) * w + b

    B, T, D = x.shape
    hd = D // n_head
    scale = hd ** (-0.25)

    h = ln(x, p["attn_ln_w"], p["attn_ln_b"]).astype(x.dtype)
    q = h @ p["wq"] + p["bq"]
    k = h @ p["wk"]
    v = h @ p["wv"] + p["bv"]
    q = q.reshape(B, T, n_head, hd).transpose(0, 2, 1, 3) * scale
    k = k.reshape(B, T, n_head, hd).transpose(0, 2, 1, 3) * scale
    v = v.reshape(B, T, n_head, hd).transpose(0, 2, 1, 3)
    qk = jnp.einsum("bhqd,bhkd->bhqk", q, k).astype(jnp.float32)
    w = jax.nn.softmax(qk, axis=-1).astype(x.dtype)
    wvt = jnp.einsum("bhqk,bhkd->bhqd", w, v).transpose(0, 2, 1, 3).reshape(B, T, D)
    x = x + wvt @ p["wo"] + p["bo"]

    h = ln(x, p["mlp_ln_w"], p["mlp_ln_b"]).astype(x.dtype)
    h1 = h @ p["w1"] + p["b1"]
    g = 0.5 * h1 * (1.0 + jax.scipy.special.erf(h1 / jnp.sqrt(2.0)))
    x = x + g @ p["w2"] + p["b2"]
    return x


def make_params(key, n_state):
    n_mlp = 4 * n_state
    ks = jax.random.split(key, 16)
    nrm = lambda k, s: (0.02 * jax.random.normal(k, s)).astype(jnp.float32)
    # Linear weights created torch-style (out, in) then transposed to (in, out).
    return {
        "attn_ln_w": 1.0 + nrm(ks[0], (1, n_state)),
        "attn_ln_b": nrm(ks[1], (1, n_state)),
        "wq": nrm(ks[2], (n_state, n_state)).T,
        "bq": nrm(ks[3], (1, n_state)),
        "wk": nrm(ks[4], (n_state, n_state)).T,
        "wv": nrm(ks[5], (n_state, n_state)).T,
        "bv": nrm(ks[6], (1, n_state)),
        "wo": nrm(ks[7], (n_state, n_state)).T,
        "bo": nrm(ks[8], (1, n_state)),
        "mlp_ln_w": 1.0 + nrm(ks[9], (1, n_state)),
        "mlp_ln_b": nrm(ks[10], (1, n_state)),
        "w1": nrm(ks[11], (n_mlp, n_state)).T,
        "b1": nrm(ks[12], (1, n_mlp)),
        "w2": nrm(ks[13], (n_state, n_mlp)).T,
        "b2": nrm(ks[14], (1, n_state)),
    }


if __name__ == "__main__":
    # Small but representative shapes (head_dim=64 like real Whisper):
    #   T=20 -> padded to 24 (mask path), 3 q-tiles,
    #   H=4 heads with head_block=2 -> 2 lane-dense (128-wide) head blocks,
    #   n_mlp=1024 with mlp_tile=256 -> 4 MLP reduction chunks.
    B, T, D, H = 2, 20, 256, 4
    key = jax.random.PRNGKey(0)
    kx, kp = jax.random.split(key)
    x = jax.random.normal(kx, (B, T, D), dtype=jnp.float32)
    params = make_params(kp, D)

    out = residual_attention_block(x, params, n_head=H, seq_tile=8, mlp_tile=256)
    out = jax.block_until_ready(out)

    ref = reference(x, params, n_head=H)
    assert out.shape == (B, T, D)
    # bf16 matmul operands + approx reciprocal inside GELU -> loosened tolerance.
    assert jnp.allclose(out, ref, rtol=2e-2, atol=2e-2), (
        f"max abs diff {jnp.max(jnp.abs(out - ref))}")

    print("KERNEL_OK")
</pallas_src>

<mosaic_0001>
module attributes {stable_mosaic.version = 11 : i64} {
  func.func @_probe_buffered_kernel(%arg0: i32, %arg1: memref<8x128xf32, #tpu.memory_space<vmem>>, %arg2: memref<8x128xf32, #tpu.memory_space<vmem>>) attributes {dimension_semantics = [#tpu.dimension_semantics<arbitrary>], iteration_bounds = array<i64: 2>, scalar_prefetch = 0 : i64, scratch_operands = 0 : i64, tpu.core_type = #tpu.core_type<tc>, window_params = [{pipeline_mode = #tpu.pipeline_mode<synchronous>, transform_indices = @transform_0, window_bounds = array<i64: 8, 128>}, {pipeline_mode = #tpu.pipeline_mode<synchronous>, transform_indices = @transform_1, window_bounds = array<i64: 8, 128>}]} {
    %c0 = arith.constant 0 : index
    %c0_0 = arith.constant 0 : index
    %0 = vector.load %arg1[%c0, %c0_0] : memref<8x128xf32, #tpu.memory_space<vmem>>, vector<8x128xf32>
    %cst = arith.constant 1.000000e+00 : f32
    %1 = vector.broadcast %cst : f32 to vector<8x128xf32>
    %2 = arith.addf %0, %1 : vector<8x128xf32>
    %c0_1 = arith.constant 0 : index
    %c0_2 = arith.constant 0 : index
    %3 = vector.load %arg2[%c0_1, %c0_2] : memref<8x128xf32, #tpu.memory_space<vmem>>, vector<8x128xf32>
    tpu.vector_store %arg2[%c0_1, %c0_2], %2 {strides = array<i32>} : memref<8x128xf32, #tpu.memory_space<vmem>>, vector<8x128xf32>,
    return
  }
  func.func @transform_0(%arg0: i32) -> (i32, i32) {
    %c0_i32 = arith.constant 0 : i32
    %c0_i32_0 = arith.constant 0 : i32
    %c0_i32_1 = arith.constant 0 : i32
    return %c0_i32, %c0_i32_0 : i32, i32
  }
  func.func @transform_1(%arg0: i32) -> (i32, i32) {
    %c0_i32 = arith.constant 0 : i32
    %c0_i32_0 = arith.constant 0 : i32
    %c0_i32_1 = arith.constant 0 : i32
    return %c0_i32, %c0_i32_0 : i32, i32
  }
}

module attributes {stable_mosaic.version = 11 : i64} {
  func.func @_ln_qkv_kernel(%arg0: i32, %arg1: i32, %arg2: memref<1x8x256xf32, #tpu.memory_space<vmem>>, %arg3: memref<1x256xf32, #tpu.memory_space<vmem>>, %arg4: memref<1x256xf32, #tpu.memory_space<vmem>>, %arg5: memref<256x768xbf16, #tpu.memory_space<vmem>>, %arg6: memref<1x768xf32, #tpu.memory_space<vmem>>, %arg7: memref<1x8x256xbf16, #tpu.memory_space<vmem>>, %arg8: memref<1x8x256xbf16, #tpu.memory_space<vmem>>, %arg9: memref<1x8x256xbf16, #tpu.memory_space<vmem>>) attributes {dimension_semantics = [#tpu.dimension_semantics<parallel>, #tpu.dimension_semantics<parallel>], iteration_bounds = array<i64: 2, 3>, scalar_prefetch = 0 : i64, scratch_operands = 0 : i64, tpu.core_type = #tpu.core_type<tc>, window_params = [{transform_indices = @transform_0, window_bounds = array<i64: 1, 8, 256>}, {pipeline_mode = #tpu.pipeline_mode<synchronous>, transform_indices = @transform_1, window_bounds = array<i64: 1, 256>}, {pipeline_mode = #tpu.pipeline_mode<synchronous>, transform_indices = @transform_2, window_bounds = array<i64: 1, 256>}, {pipeline_mode = #tpu.pipeline_mode<synchronous>, transform_indices = @transform_3, window_bounds = array<i64: 256, 768>}, {pipeline_mode = #tpu.pipeline_mode<synchronous>, transform_indices = @transform_4, window_bounds = array<i64: 1, 768>}, {transform_indices = @transform_5, window_bounds = array<i64: 1, 8, 256>}, {transform_indices = @transform_6, window_bounds = array<i64: 1, 8, 256>}, {transform_indices = @transform_7, window_bounds = array<i64: 1, 8, 256>}]} {
    %c0 = arith.constant 0 : index
    %c0_0 = arith.constant 0 : index
    %c0_1 = arith.constant 0 : index
    %0 = vector.load %arg2[%c0, %c0_0, %c0_1] : memref<1x8x256xf32, #tpu.memory_space<vmem>>, vector<1x8x256xf32>
    %1 = vector.shape_cast %0 : vector<1x8x256xf32> to vector<8x256xf32>
    %c0_2 = arith.constant 0 : index
    %c0_3 = arith.constant 0 : index
    %2 = vector.load %arg3[%c0_2, %c0_3] : memref<1x256xf32, #tpu.memory_space<vmem>>, vector<1x256xf32>
    %c0_4 = arith.constant 0 : index
    %c0_5 = arith.constant 0 : index
    %3 = vector.load %arg4[%c0_4, %c0_5] : memref<1x256xf32, #tpu.memory_space<vmem>>, vector<1x256xf32>
    %cst = arith.constant dense<0.000000e+00> : vector<8xf32>
    %4 = vector.multi_reduction <add>, %1, %cst [1] : vector<8x256xf32> to vector<8xf32>
    %5 = vector.shape_cast %4 : vector<8xf32> to vector<8x1xf32>
    %cst_6 = arith.constant 2.560000e+02 : f32
    %6 = vector.broadcast %cst_6 : f32 to vector<8x1xf32>
    %7 = arith.divf %5, %6 : vector<8x1xf32>
    %8 = vector.broadcast %7 : vector<8x1xf32> to vector<8x256xf32>
    %9 = arith.subf %1, %8 : vector<8x256xf32>
    %10 = arith.mulf %9, %9 : vector<8x256xf32>
    %cst_7 = arith.constant dense<0.000000e+00> : vector<8xf32>
    %11 = vector.multi_reduction <add>, %10, %cst_7 [1] : vector<8x256xf32> to vector<8xf32>
    %12 = vector.shape_cast %11 : vector<8xf32> to vector<8x1xf32>
    %cst_8 = arith.constant 2.560000e+02 : f32
    %13 = vector.broadcast %cst_8 : f32 to vector<8x1xf32>
    %14 = arith.divf %12, %13 : vector<8x1xf32>
    %15 = vector.broadcast %7 : vector<8x1xf32> to vector<8x256xf32>
    %16 = arith.subf %1, %15 : vector<8x256xf32>
    %cst_9 = arith.constant 9.99999974E-6 : f32
    %17 = vector.broadcast %cst_9 : f32 to vector<8x1xf32>
    %18 = arith.addf %14, %17 : vector<8x1xf32>
    %19 = math.rsqrt %18 : vector<8x1xf32>
    %20 = vector.broadcast %19 : vector<8x1xf32> to vector<8x256xf32>
    %21 = arith.mulf %16, %20 : vector<8x256xf32>
    %22 = vector.broadcast %2 : vector<1x256xf32> to vector<8x256xf32>
    %23 = arith.mulf %21, %22 : vector<8x256xf32>
    %24 = vector.broadcast %3 : vector<1x256xf32> to vector<8x256xf32>
    %25 = arith.addf %23, %24 : vector<8x256xf32>
    %26 = arith.truncf %25 : vector<8x256xf32> to vector<8x256xbf16>
    %c0_10 = arith.constant 0 : index
    %c0_11 = arith.constant 0 : index
    %27 = vector.load %arg5[%c0_10, %c0_11] : memref<256x768xbf16, #tpu.memory_space<vmem>>, vector<256x768xbf16>
    %cst_12 = arith.constant dense<0.000000e+00> : vector<8x768xf32>
    %28 = tpu.matmul %26, %27, %cst_12 {dimension_numbers = #tpu.dot_dimension_numbers<[1], [0], [0], [1], [0, 0, 1, 1], [], []>} : vector<8x256xbf16>, vector<256x768xbf16>, vector<8x768xf32> -> vector<8x768xf32>
    %c0_13 = arith.constant 0 : index
    %c0_14 = arith.constant 0 : index
    %29 = vector.load %arg6[%c0_13, %c0_14] : memref<1x768xf32, #tpu.memory_space<vmem>>, vector<1x768xf32>
    %30 = vector.broadcast %29 : vector<1x768xf32> to vector<8x768xf32>
    %31 = arith.addf %28, %30 : vector<8x768xf32>
    %32 = vector.extract_strided_slice %31 {offsets = [0, 0], sizes = [8, 256], strides = [1, 1]} : vector<8x768xf32> to vector<8x256xf32>
    %33 = arith.truncf %32 : vector<8x256xf32> to vector<8x256xbf16>
    %c0_15 = arith.constant 0 : index
    %c0_16 = arith.constant 0 : index
    %c0_17 = arith.constant 0 : index
    %34 = vector.load %arg7[%c0_15, %c0_16, %c0_17] : memref<1x8x256xbf16, #tpu.memory_space<vmem>>, vector<1x8x256xbf16>
    %35 = vector.shape_cast %34 : vector<1x8x256xbf16> to vector<8x256xbf16>
    %36 = vector.shape_cast %33 : vector<8x256xbf16> to vector<1x8x256xbf16>
    tpu.vector_store %arg7[%c0_15, %c0_16, %c0_17], %36 {strides = array<i32>} : memref<1x8x256xbf16, #tpu.memory_space<vmem>>, vector<1x8x256xbf16>,
    %37 = vector.extract_strided_slice %31 {offsets = [0, 256], sizes = [8, 256], strides = [1, 1]} : vector<8x768xf32> to vector<8x256xf32>
    %38 = arith.truncf %37 : vector<8x256xf32> to vector<8x256xbf16>
    %c0_18 = arith.constant 0 : index
    %c0_19 = arith.constant 0 : index
    %c0_20 = arith.constant 0 : index
    %39 = vector.load %arg8[%c0_18, %c0_19, %c0_20] : memref<1x8x256xbf16, #tpu.memory_space<vmem>>, vector<1x8x256xbf16>
    %40 = vector.shape_cast %39 : vector<1x8x256xbf16> to vector<8x256xbf16>
    %41 = vector.shape_cast %38 : vector<8x256xbf16> to vector<1x8x256xbf16>
    tpu.vector_store %arg8[%c0_18, %c0_19, %c0_20], %41 {strides = array<i32>} : memref<1x8x256xbf16, #tpu.memory_space<vmem>>, vector<1x8x256xbf16>,
    %42 = vector.extract_strided_slice %31 {offsets = [0, 512], sizes = [8, 256], strides = [1, 1]} : vector<8x768xf32> to vector<8x256xf32>
    %43 = arith.truncf %42 : vector<8x256xf32> to vector<8x256xbf16>
    %c0_21 = arith.constant 0 : index
    %c0_22 = arith.constant 0 : index
    %c0_23 = arith.constant 0 : index
    %44 = vector.load %arg9[%c0_21, %c0_22, %c0_23] : memref<1x8x256xbf16, #tpu.memory_space<vmem>>, vector<1x8x256xbf16>
    %45 = vector.shape_cast %44 : vector<1x8x256xbf16> to vector<8x256xbf16>
    %46 = vector.shape_cast %43 : vector<8x256xbf16> to vector<1x8x256xbf16>
    tpu.vector_store %arg9[%c0_21, %c0_22, %c0_23], %46 {strides = array<i32>} : memref<1x8x256xbf16, #tpu.memory_space<vmem>>, vector<1x8x256xbf16>,
    return
  }
  func.func @transform_0(%arg0: i32, %arg1: i32) -> (i32, i32, i32) {
    %c0_i32 = arith.constant 0 : i32
    %c0_i32_0 = arith.constant 0 : i32
    return %arg0, %arg1, %c0_i32 : i32, i32, i32
  }
  func.func @transform_1(%arg0: i32, %arg1: i32) -> (i32, i32) {
    %c0_i32 = arith.constant 0 : i32
    %c0_i32_0 = arith.constant 0 : i32
    %c0_i32_1 = arith.constant 0 : i32
    return %c0_i32, %c0_i32_0 : i32, i32
  }
  func.func @transform_2(%arg0: i32, %arg1: i32) -> (i32, i32) {
    %c0_i32 = arith.constant 0 : i32
    %c0_i32_0 = arith.constant 0 : i32
    %c0_i32_1 = arith.constant 0 : i32
    return %c0_i32, %c0_i32_0 : i32, i32
  }
  func.func @transform_3(%arg0: i32, %arg1: i32) -> (i32, i32) {
    %c0_i32 = arith.constant 0 : i32
    %c0_i32_0 = arith.constant 0 : i32
    %c0_i32_1 = arith.constant 0 : i32
    return %c0_i32, %c0_i32_0 : i32, i32
  }
  func.func @transform_4(%arg0: i32, %arg1: i32) -> (i32, i32) {
    %c0_i32 = arith.constant 0 : i32
    %c0_i32_0 = arith.constant 0 : i32
    %c0_i32_1 = arith.constant 0 : i32
    return %c0_i32, %c0_i32_0 : i32, i32
  }
  func.func @transform_5(%arg0: i32, %arg1: i32) -> (i32, i32, i32) {
    %c0_i32 = arith.constant 0 : i32
    %c0_i32_0 = arith.constant 0 : i32
    return %arg0, %arg1, %c0_i32 : i32, i32, i32
  }
  func.func @transform_6(%arg0: i32, %arg1: i32) -> (i32, i32, i32) {
    %c0_i32 = arith.constant 0 : i32
    %c0_i32_0 = arith.constant 0 : i32
    return %arg0, %arg1, %c0_i32 : i32, i32, i32
  }
  func.func @transform_7(%arg0: i32, %arg1: i32) -> (i32, i32, i32) {
    %c0_i32 = arith.constant 0 : i32
    %c0_i32_0 = arith.constant 0 : i32
    return %arg0, %arg1, %c0_i32 : i32, i32, i32
  }
}

</mosaic_0001>

<bundles_post_ra>
// kernel: tpu_custom_call.1
= control target key start
LH: loop header
LB: loop body
LE: loop exit
PB: predicated region body
PF: predicated region fallthrough
CT: control target
= control target key end

     0   :  { %6 = vsyncpa [#allocation3], 0  ;;  %s341_s0 = inlined_call_operand.hbm [shape: f32[8,128], index: 0, kind: input, shape index: {}]   ;;  %s342_s1 = inlined_call_operand.hbm [shape: f32[8,128], index: 1, kind: output, shape index: {}]  }
   0x1   :  { %7 = vsyncpa [#allocation4], 0  ;;  %s262_s6 = smov 0  }
   0x2 LB: > { %s145_s7 = sadd.s32 4294967295, %s248_s6   ;;  %p146_p0 = scmp.ge.s32.totalorder %s248_s6, 1  ;;  %s248_s6 = sphi %s262_s6, %s13_s6  }
   0x3   : > { %p60_p1 = scmp.lt.s32.totalorder %s248_s6, 3  ;;  %p276_p3 = scmp.eq.s32.totalorder %s145_s7, 0 }
   0x4   : > { %s250_s10 = smov [#allocation2]   ;;  %s180_s15 = scalar_lea.hbm %s341_s0, 128 }
   0x5   : > { %p270_p2 = pnand %p146_p0, %p60_p1  ;;  %s73_s11 = sshll.u32 %s250_s10, 4  ;;  %s74_s11 = int_to_ptr.vmem [resolvable:$true] %s73_s11 }
   0x6   : > { %s347_s9 = scalar_select %p276_p3, 1, 0 }
   0x7   : > { %s346_s8 = scalar_select %p270_p2, 1, 0 }
   0x8   : > { %p162_p4 = pneg %p270_p2  ;;  %p181_p6 = scmp.ne.s32.totalorder %s341_s0, %s180_s15 }
   0x9   : > { %p187_p10 = scmp.lt.u32.totalorder %s180_s15, %s341_s0 }
   0xa   : > { %p284_p5 = pnand %p276_p3, %p162_p4 }
   0xc   : > { %p182_p7 = pneg %p284_p5 }
   0xe   : > { %p183_p8 = pnand %p182_p7, %p181_p6 }
  0x10   : > { %p184_p9 = pneg %p183_p8 }
  0x12   : > { %p189_p11 = pnand %p187_p10, %p184_p9 }
  0x14   : > { %192 = shalt.err (!%p189_p11)
}
  0x15   : > { %s193_s20 = scalar_lea.vmem %s74_s11, 128  ;;  %p201_p1 = scmp.lt.s32.totalorder %s74_s11, %s74_s11 }
  0x16   : > { %p194_p12 = scmp.ne.s32.totalorder %s74_s11, %s193_s20  ;;  %p202_p4 = scmp.lt.s32.totalorder %s193_s20, %s193_s20 }
  0x18   : > { %p196_p13 = pnand %p194_p12, %p182_p7  ;;  %p203_p3 = por %p202_p4, %p201_p1 }
  0x1a   : > { %p197_p0 = pneg %p196_p13 }
  0x1c   : > { %p204_p2 = pnand %p203_p3, %p197_p0 }
  0x1e   : > { %207 = shalt.err (!%p204_p2)
}
  0x1f   : > { %165 = dma.hbm_to_vmem [thread:$0]  (!%p284_p5), %s341_s0, 128, %s74_s11, [#allocation3]  }
  0x20   : > { %p349_p6 = scmp.ne.s32.totalorder %s346_s8, 0 }
  0x21   : > { %p350_p8 = scmp.ne.s32.totalorder (!%p349_p6), %s347_s9, 0 }
  0x22   : > { %86 = sbr.rel (%p349_p6) target bundleno = 67 (0x43), region = 24 }
  0x29   : > { %239 = dma.done.wait (%p350_p8), [#allocation3], 128  }
  0x2a   : > { %241 = vsyncadd (%p350_p8), [#allocation3], 4294967168  ;;  %s251_s23 = smov [#allocation5]   ;;  %v96_v0 = vld [vmem:[#allocation2] sm:$0xff]  ;;  %p312_p2 = scmp.eq.s32.totalorder %s145_s7, 1 }
  0x2b   : > { %s106_s24 = sshll.u32 %s251_s23, 4  ;;  %v97_v1 = vadd.f32 1.0, %v96_v0  ;;  %s107_s24 = int_to_ptr.vmem [resolvable:$true] %s106_s24 }
  0x2c   : > { %s208_s26 = scalar_lea.vmem %s107_s24, 128  ;;  %p215_p9 = scmp.lt.s32.totalorder %s107_s24, %s107_s24 }
  0x2d   : > { %98 = vst [vmem:[#allocation5] sm:$0xff] %v97_v1  ;;  %p209_p3 = scmp.ne.s32.totalorder %s107_s24, %s208_s26  ;;  %p216_p10 = scmp.lt.s32.totalorder %s208_s26, %s208_s26 }
  0x2f   : > { %p210_p5 = pnand %p209_p3, %p312_p2  ;;  %p217_p11 = por %p216_p10, %p215_p9 }
  0x31   : > { %p211_p7 = pneg %p210_p5 }
  0x33   : > { %p218_p12 = pnand %p217_p11, %p211_p7 }
  0x35   : > { %221 = shalt.err (!%p218_p12)
}
  0x36   : > { %s222_s29 = scalar_lea.hbm %s342_s1, 128 }
  0x37   : > { %p223_p13 = scmp.ne.s32.totalorder %s342_s1, %s222_s29  ;;  %p228_p4 = scmp.lt.u32.totalorder %s222_s29, %s342_s1 }
  0x39   : > { %p224_p0 = pnand %p223_p13, %p312_p2 }
  0x3b   : > { %p225_p1 = pneg %p224_p0 }
  0x3d   : > { %p230_p6 = pnand %p228_p4, %p225_p1 }
  0x3f   : > { %233 = shalt.err (!%p230_p6)
}
  0x40   : > { %159 = dma.vmem_to_hbm [thread:$0]  (%p312_p2), %s107_s24, 128, %s342_s1, [#allocation4]  }
  0x41   : > { %243 = dma.done.wait (%p312_p2), [#allocation4], 128  }
  0x42   : > { %245 = vsyncadd (%p312_p2), [#allocation4], 4294967168 }
  0x43 PF: > { %s13_s6 = sadd.s32 1, %s248_s6  }
  0x44   : > { %p10_p8 = scmp.ge.s32.totalorder %s13_s6, 4  }
  0x46   :  { %12 = sbr.rel (!%p10_p8) target bundleno = 2 (0x2), region = 53 }
  0x4d   :  { %119 = vsyncpa [#allocation3], 1 }
  0x4e   :  { %121 = vsyncpa [#allocation3 + $0x1], 1 }
  0x4f   :  { %122 = vsyncpa [#allocation4], 1 }
  0x50   :  { %124 = vsyncpa [#allocation4 + $0x1], 1 }

// kernel: tpu_custom_call.1
= control target key start
LH: loop header
LB: loop body
LE: loop exit
PB: predicated region body
PF: predicated region fallthrough
CT: control target
= control target key end

     0   :  { %s2389_s0 = inlined_call_operand.hbm [shape: f32[2,24,256], index: 0, kind: input, shape index: {}]   ;;  %s2390_s1 = inlined_call_operand.vmem [shape: f32[1,256], index: 1, kind: input, shape index: {}]   ;;  %s2391_s2 = inlined_call_operand.vmem [shape: f32[1,256], index: 2, kind: input, shape index: {}]   ;;  %s2392_s3 = inlined_call_operand.hbm [shape: bf16[256,768], index: 3, kind: input, shape index: {}]   ;;  %s2393_s4 = inlined_call_operand.vmem [shape: f32[1,768], index: 4, kind: input, shape index: {}]   ;;  %s2394_s5 = inlined_call_operand.hbm [shape: bf16[2,24,256], index: 5, kind: output, shape index: {0}]   ;;  %s2395_s6 = inlined_call_operand.hbm [shape: bf16[2,24,256], index: 6, kind: output, shape index: {1}]   ;;  %s2396_s7 = inlined_call_operand.hbm [shape: bf16[2,24,256], index: 7, kind: output, shape index: {2}]  }
   0x1   :  { %2409 = sst [smem:[#allocation20_spill]] %s2392_s3 }
   0x2   :  { %2410 = sst [smem:[#allocation21_spill]] %s2394_s5 }
   0x3   :  { %2411 = sst [smem:[#allocation22_spill]] %s2395_s6 }
   0x4   :  { %2412 = sst [smem:[#allocation23_spill]] %s2396_s7 }
   0x5   :  { %13 = vsyncpa [#allocation3], 0 }
   0x6   :  { %15 = vsyncpa [#allocation3 + $0x1], 0 }
   0x7   :  { %16 = vsyncpa [#allocation6], 0 }
   0x8   :  { %17 = vsyncpa [#allocation4], 0 }
   0x9   :  { %19 = vsyncpa [#allocation4 + $0x1], 0 }
   0xa   :  { %20 = vsyncpa [#allocation9], 0 }
   0xb   :  { %22 = vsyncpa [#allocation9 + $0x1], 0  ;;  %s2027_s24 = smov 0   ;;  %s2029_s25 = smov 0  }
   0xc   :  { %s2031_s26 = smov 0   ;;  %s2033_s27 = smov 0  }
   0xd   :  { %s2035_s28 = smov 0   ;;  %s2037_s29 = smov 0  }
   0xe   :  { %s2039_s30 = smov 0   ;;  %s2041_s8 = smov 0  }
   0xf LB: > { %2413 = sst [smem:[#allocation15_spill]] %s1950_s24  ;;  %s2068_s9 = sadd.s32 4294967295, %s1978_s8   ;;  %s1978_s8 = sphi %s2041_s8, %s28_s8   ;;  %s1974_s30 = sphi %s2039_s30, %s2446_s30   ;;  %s1970_s29 = sphi %s2037_s29, %s2440_s29   ;;  %s1966_s28 = sphi %s2035_s28, %s2445_s28   ;;  %s1962_s27 = sphi %s2033_s27, %s2439_s27   ;;  %s1958_s26 = sphi %s2031_s26, %s2444_s26   ;;  %s1954_s25 = sphi %s2029_s25, %s2443_s25   ;;  %s1950_s24 = sphi %s2027_s24, %s2442_s24  }
  0x10   : > { %2414 = sst [smem:[#allocation16_spill]] %s1970_s29  ;;  %s2400_s10 = sadd.s32 4294967294, %s1978_s8  }
  0x11   : > { %p62_p0 = scmp.ne.s32.totalorder %s1954_s25, %s1950_s24  ;;  %p2397_p1 = scmp.eq.s32.totalorder %s2068_s9, 0 }
  0x12   : > { %p178_p3 = scmp.eq.s32.totalorder %s2400_s10, 5  ;;  %p1382_p5 = scmp.ge.s32.totalorder %s1978_s8, 1 }
  0x13   : > { %p2079_p4 = por %p2397_p1, %p62_p0  ;;  %p241_p7 = scmp.lt.s32.totalorder %s1978_s8, 7 }
  0x14   : > { %p2084_p6 = por %p178_p3, %p62_p0  ;;  %s1980_s14 = smov [#allocation5]  }
  0x15   : > { %s2415_s11 = scalar_select %p2079_p4, 1, 0 }
  0x16   : > { %s2416_s12 = scalar_select %p2084_p6, 1, 0 }
  0x17   : > { %p2089_p8 = pnand %p1382_p5, %p241_p7  ;;  %s259_s15 = sshll.u32 %s1980_s14, 4  ;;  %s260_s15 = int_to_ptr.vmem [resolvable:$true] %s259_s15 }
  0x18   : > { %2417 = sst [smem:[#allocation17_spill]] %s2416_s12 }
  0x19   : > { %s2418_s13 = scalar_select %p2089_p8, 1, 0 }
  0x1a   : > { %p1523_p9 = pneg %p2089_p8  ;;  %s2420_s3 = sld [smem:[#allocation20_spill]] }
  0x1c   : > { %p2097_p10 = pnand %p1523_p9, %p2397_p1 }
  0x1e   : > { %p1760_p12 = pneg %p2097_p10 }
  0x20   : > { %s1758_s19 = scalar_lea.hbm %s2420_s3, 12288 }
  0x21   : > { %p1759_p11 = scmp.ne.s32.totalorder %s2420_s3, %s1758_s19  ;;  %p1765_p3 = scmp.lt.u32.totalorder %s1758_s19, %s2420_s3 }
  0x23   : > { %p1761_p13 = pnand %p1760_p12, %p1759_p11 }
  0x25   : > { %p1762_p0 = pneg %p1761_p13 }
  0x27   : > { %p1767_p5 = pnand %p1765_p3, %p1762_p0 }
  0x29   : > { %1770 = shalt.err (!%p1767_p5)
}
  0x2a   : > { %s1771_s14 = scalar_lea.vmem %s260_s15, 12288  ;;  %p1779_p2 = scmp.lt.s32.totalorder %s260_s15, %s260_s15 }
  0x2b   : > { %p1772_p7 = scmp.ne.s32.totalorder %s260_s15, %s1771_s14  ;;  %p1780_p6 = scmp.lt.s32.totalorder %s1771_s14, %s1771_s14 }
  0x2d   : > { %p1774_p9 = pnand %p1772_p7, %p1760_p12  ;;  %p1781_p4 = por %p1780_p6, %p1779_p2 }
  0x2f   : > { %p1775_p1 = pneg %p1774_p9 }
  0x31   : > { %p1782_p8 = pnand %p1781_p4, %p1775_p1 }
  0x33   : > { %1785 = shalt.err (!%p1782_p8)
}
  0x34   : > { %s1981_s17 = smov 384   ;;  %s1982_s18 = smov 24  }
  0x35   : > { %1526 = dma.hbm_to_vmem [thread:$0]  (!%p2097_p10), %s2420_s3, 12288, %s260_s15, [#allocation6], %s1981_s17, %s1981_s17, %s1982_s18  }
  0x36   : > { %s37_s21 = sadd.s32 1, %s1970_s29  ;;  %s40_s22 = sadd.s32 1, %s1974_s30 }
  0x37   : > { %p38_p1 = scmp.ge.s32.totalorder %s37_s21, 3  ;;  %s49_s23 = sadd.s32 1, %s1958_s26 }
  0x38   : > { %p56_p2 = scmp.ne.s32.totalorder %s1958_s26, %s1954_s25  ;;  %p57_p4 = scmp.eq.s32.totalorder %s1978_s8, 0 }
  0x39   : > { %s2448_s21 = smov (%p38_p1, %s37_s21), 0  ;;  %s2450_s22 = smov (!%p38_p1, %s40_s22), %s1974_s30 }
  0x3a   : > { %2421 = sst [smem:[#allocation18_spill]] %s2448_s21  ;;  %s45_s14 = ssub.s32 %s1970_s29, %s2448_s21 }
  0x3b   : > { %p42_p6 = scmp.ge.s32.totalorder %s2450_s22, 2  ;;  %p2422_p8 = scmp.eq.s32.totalorder %s2068_s9, 5 }
  0x3c   : > { %p2134_p10 = por %p57_p4, %p56_p2  ;;  %p1542_p12 = scmp.lt.s32.totalorder %s1978_s8, 6 }
  0x3d   : > { %p2130_p11 = por %p2422_p8, %p56_p2  ;;  %s2452_s22 = smov (%p42_p6, %s2450_s22), 0 }
  0x3e   : > { %2425 = sst [smem:[#allocation19_spill]] %s2452_s22  ;;  %s276_s17 = sand.u32 1, %s1958_s26  }
  0x3f   : > { %s1386_s18 = sshll.u32 %s1970_s29, 1  ;;  %s44_s19 = ssub.s32 %s1974_s30, %s2452_s22 }
  0x40   : > { %s46_s20 = sor.u32 %s45_s14, %s44_s19  ;;  %s1385_s10 = sshll.u32 %s276_s17, 4 }
  0x41   : > { %p47_p13 = scmp.eq.s32.totalorder %s46_s20, 0  ;;  %s1507_s3 = smul.u32 6, %s1974_s30 }
  0x42   : > { %s280_s21 = scalar_lea.vmem [#allocation2], %s1385_s10  ;;  %p2155_p0 = pnand %p1542_p12, %p2134_p10 }
  0x43   : > { %s290_s12 = sshll.u32 %s280_s21, 4  ;;  %s286_s7 = sadd.s32 %s1507_s3, %s1386_s18  ;;  %s2149_s12 = int_to_ptr.vmem [resolvable:$true] %s290_s12 }
  0x44   : > { %s2147_s24 = scalar_select %p47_p13, %s1958_s26, %s49_s23  }
  0x45   : > { %s1387_s5 = sshll.u32 %s286_s7, 7  ;;  %s277_s3 = scalar_lea.sflag [#allocation3], %s276_s17 }
  0x46   : > { %s2162_s14 = scalar_lea.hbm %s2389_s0, %s1387_s5  ;;  %p1788_p5 = pneg %p2155_p0 }
  0x47   : > { %s1786_s10 = scalar_lea.hbm %s2162_s14, 256  ;;  %s1791_s29 = scalar_lea.hbm %s2389_s0, 1536 }
  0x48   : > { %p1787_p3 = scmp.ne.s32.totalorder %s2162_s14, %s1786_s10  ;;  %p1792_p1 = scmp.lt.u32.totalorder %s2162_s14, %s2389_s0 }
  0x49   : > { %p1793_p2 = scmp.lt.u32.totalorder %s1791_s29, %s1786_s10  ;;  %p1795_p6 = scmp.lt.u32.totalorder %s1786_s10, %s2162_s14 }
  0x4a   : > { %p1789_p7 = pnand %p1788_p5, %p1787_p3 }
  0x4b   : > { %p1794_p4 = por %p1793_p2, %p1792_p1 }
  0x4c   : > { %p1790_p9 = pneg %p1789_p7 }
  0x4d   : > { %p1796_p8 = por %p1795_p6, %p1794_p4 }
  0x4f   : > { %p1797_p10 = pnand %p1796_p8, %p1790_p9 }
  0x51   : > { %1800 = shalt.err (!%p1797_p10)
}
  0x52   : > { %s1801_s23 = scalar_lea.vmem %s2149_s12, 256  ;;  %s1983_s15 = smov [#allocation2]  }
  0x53   : > { %p1802_p12 = scmp.ne.s32.totalorder %s2149_s12, %s1801_s23  ;;  %s1806_s17 = sshll.u32 %s1983_s15, 4  ;;  %s1807_s17 = int_to_ptr.vmem [resolvable:$false] %s1806_s17 }
  0x54   : > { %s1808_s18 = scalar_lea.vmem %s1807_s17, 512  ;;  %p1809_p7 = scmp.lt.s32.totalorder %s2149_s12, %s1807_s17 }
  0x55   : > { %p1804_p13 = pnand %p1802_p12, %p1788_p5  ;;  %p1810_p1 = scmp.lt.s32.totalorder %s1808_s18, %s1801_s23 }
  0x57   : > { %p1805_p3 = pneg %p1804_p13  ;;  %p1811_p2 = por %p1810_p1, %p1809_p7 }
  0x59   : > { %p1812_p4 = pnand %p1811_p2, %p1805_p3 }
  0x5b   : > { %1815 = shalt.err (!%p1812_p4)
}
  0x5c   : > { %1530 = dma.hbm_to_vmem [thread:$0]  (!%p2155_p0), %s2162_s14, 256, %s2149_s12, %s277_s3  }
  0x5d   : > { %p2427_p9 = scmp.ne.s32.totalorder %s2418_s13, 0 }
  0x5e   : > { %s2192_s19 = sand.u32 (!%p2427_p9), 1, %s1954_s25   ;;  %p2428_p5 = scmp.ne.s32.totalorder (!%p2427_p9), %s2415_s11, 0 }
  0x5f   : > { %299 = sbr.rel (%p2427_p9) target bundleno = 720 (0x2d0), region = 40  ;;  %s1389_s20 = sshll.u32 (!%p2427_p9), %s2192_s19, 4 }
  0x60   : > { %s302_s10 = scalar_lea.sflag (!%p2427_p9), [#allocation3], %s2192_s19  ;;  %s305_s7 = scalar_lea.vmem (!%p2427_p9), [#allocation2], %s1389_s20 }
  0x66   : > { %1933 = dma.done.wait (%p2428_p5), %s302_s10, 256  }
  0x67   : > { %1935 = vsyncadd (%p2428_p5), %s302_s10, 4294967040  ;;  %p2429_p6 = scmp.eq.s32.totalorder %s2068_s9, 0 }
  0x69   : > { %1937 = dma.done.wait (%p2429_p6), [#allocation6], 12288   ;;  %p2430_p0 = pmov %p2429_p6 }
  0x6a   : > { %v2204_v0 = vld [vmem:[%s305_s7] sm:$0xff]  ;;  %v2206_v1 = vld [vmem:[%s305_s7 + $0x8] sm:$0xff]  ;;  %s1508_s14 = smul.u32 6, %s1966_s28  ;;  %s1496_s29 = sshll.u32 %s1962_s27, 1 }
  0x6b   : > { %1939 = vsyncadd (%p2430_p0), [#allocation6], 4294955008  ;;  %v354_v2 = vadd.f32 %v2206_v1, %v2204_v0  ;;  %v1612_v3 = vld [vmem:[#allocation5 + $0x4] ss:$24 sps:$4 sm:$0xff]   ;;  %v1614_v4 = vld [vmem:[#allocation5] ss:$24 sps:$4 sm:$0xff]  }
  0x6c   : > { %v1615_v5 = vld [vmem:[#allocation5 + $0xc] ss:$24 sps:$4 sm:$0xff]   ;;  %v1617_v6 = vld [vmem:[#allocation5 + $0x8] ss:$24 sps:$4 sm:$0xff]   ;;  %1007 = vmatprep.subr.bf16.mxu0 %v1612_v3  ;;  %v1621_v8 = vld [vmem:[#allocation5 + $0x3c] ss:$24 sps:$4 sm:$0xff]   ;;  %s1180_s5 = sadd.s32 %s1508_s14, %s1496_s29 }
  0x6d   : > { %355 = vadd.xlane.f32.xlu0 %v354_v2  ;;  %v1618_v7 = vld [vmem:[#allocation5 + $0x34] ss:$24 sps:$4 sm:$0xff]   ;;  %1048 = vmatprep.subr.bf16.mxu1 %v1615_v5  ;;  %v1620_v9 = vld [vmem:[#allocation5 + $0x30] ss:$24 sps:$4 sm:$0xff]   ;;  %v1624_v11 = vld [vmem:[#allocation5 + $0x64] ss:$24 sps:$4 sm:$0xff]  }
  0x6e   : > { %1008 = vmatpush1.bf16.msra.mxu0 %v1614_v4  ;;  %1049 = vmatpush1.bf16.msra.mxu1 %v1617_v6  ;;  %v1623_v10 = vld [vmem:[#allocation5 + $0x38] ss:$24 sps:$4 sm:$0xff]   ;;  %v1627_v12 = vld [vmem:[#allocation5 + $0x6c] ss:$24 sps:$4 sm:$0xff]   ;;  %v1629_v14 = vld [vmem:[#allocation5 + $0x68] ss:$24 sps:$4 sm:$0xff]  }
  0x6f   : > { %1009 = vmatprep.subr.bf16.mxu0 %v1618_v7  ;;  %1050 = vmatprep.subr.bf16.mxu1 %v1621_v8  ;;  %v1626_v13 = vld [vmem:[#allocation5 + $0x60] ss:$24 sps:$4 sm:$0xff]   ;;  %v1630_v15 = vld [vmem:[#allocation5 + $0x94] ss:$24 sps:$4 sm:$0xff]   ;;  %v1632_v17 = vld [vmem:[#allocation5 + $0x90] ss:$24 sps:$4 sm:$0xff]  }
  0x70   : > { %v1633_v16 = vld [vmem:[#allocation5 + $0x9c] ss:$24 sps:$4 sm:$0xff]   ;;  %v1635_v18 = vld [vmem:[#allocation5 + $0x98] ss:$24 sps:$4 sm:$0xff]   ;;  %v1639_v20 = vld [vmem:[#allocation5 + $0xcc] ss:$24 sps:$4 sm:$0xff]  }
  0x71   : > { %v1636_v19 = vld [vmem:[#allocation5 + $0xc4] ss:$24 sps:$4 sm:$0xff]   ;;  %v1638_v21 = vld [vmem:[#allocation5 + $0xc0] ss:$24 sps:$4 sm:$0xff]   ;;  %v1642_v23 = vld [vmem:[#allocation5 + $0xf4] ss:$24 sps:$4 sm:$0xff]  }
  0x72   : > { %1010 = vmatpush1.bf16.msra.mxu0 %v1620_v9  ;;  %1051 = vmatpush1.bf16.msra.mxu1 %v1623_v10  ;;  %v1641_v22 = vld [vmem:[#allocation5 + $0xc8] ss:$24 sps:$4 sm:$0xff]   ;;  %v1645_v24 = vld [vmem:[#allocation5 + $0xfc] ss:$24 sps:$4 sm:$0xff]   ;;  %v1647_v26 = vld [vmem:[#allocation5 + $0xf8] ss:$24 sps:$4 sm:$0xff]  }
  0x73   : > { %1011 = vmatprep.subr.bf16.mxu0 %v1624_v11  ;;  %1052 = vmatprep.subr.bf16.mxu1 %v1627_v12  ;;  %v1644_v25 = vld [vmem:[#allocation5 + $0xf0] ss:$24 sps:$4 sm:$0xff]   ;;  %v1648_v27 = vld [vmem:[#allocation5 + $0x124] ss:$24 sps:$4 sm:$0xff]   ;;  %v1650_v29 = vld [vmem:[#allocation5 + $0x120] ss:$24 sps:$4 sm:$0xff]  }
  0x74   : > { %v1651_v28 = vld [vmem:[#allocation5 + $0x12c] ss:$24 sps:$4 sm:$0xff]   ;;  %v1653_v30 = vld [vmem:[#allocation5 + $0x128] ss:$24 sps:$4 sm:$0xff]   ;;  %v1657_v32 = vld [vmem:[#allocation5 + $0x15c] ss:$24 sps:$4 sm:$0xff]  }
  0x75   : > { %v1654_v31 = vld [vmem:[#allocation5 + $0x154] ss:$24 sps:$4 sm:$0xff]   ;;  %v1656_v33 = vld [vmem:[#allocation5 + $0x150] ss:$24 sps:$4 sm:$0xff]   ;;  %v1660_v35 = vld [vmem:[#allocation5 + $0x184] ss:$24 sps:$4 sm:$0xff]  }
  0x76   : > { %1012 = vmatpush1.bf16.msra.mxu0 %v1626_v13  ;;  %1053 = vmatpush1.bf16.msra.mxu1 %v1629_v14  ;;  %v1659_v34 = vld [vmem:[#allocation5 + $0x158] ss:$24 sps:$4 sm:$0xff]   ;;  %v1663_v36 = vld [vmem:[#allocation5 + $0x18c] ss:$24 sps:$4 sm:$0xff]   ;;  %v1665_v38 = vld [vmem:[#allocation5 + $0x188] ss:$24 sps:$4 sm:$0xff]   ;;  %v372_v13 = vlaneseq }
  0x77   : > { %1013 = vmatprep.subr.bf16.mxu0 %v1630_v15  ;;  %1054 = vmatprep.subr.bf16.mxu1 %v1633_v16  ;;  %v1662_v37 = vld [vmem:[#allocation5 + $0x180] ss:$24 sps:$4 sm:$0xff]   ;;  %v1666_v39 = vld [vmem:[#allocation5 + $0x1b4] ss:$24 sps:$4 sm:$0xff]   ;;  %v1668_v41 = vld [vmem:[#allocation5 + $0x1b0] ss:$24 sps:$4 sm:$0xff]  }
  0x78   : > { %v1669_v40 = vld [vmem:[#allocation5 + $0x1bc] ss:$24 sps:$4 sm:$0xff]   ;;  %v1671_v42 = vld [vmem:[#allocation5 + $0x1b8] ss:$24 sps:$4 sm:$0xff]   ;;  %v1675_v52 = vld [vmem:[#allocation5 + $0x1ec] ss:$24 sps:$4 sm:$0xff]  }
  0x79   : > { %v1672_v43 = vld [vmem:[#allocation5 + $0x1e4] ss:$24 sps:$4 sm:$0xff]   ;;  %v1674_v51 = vld [vmem:[#allocation5 + $0x1e0] ss:$24 sps:$4 sm:$0xff]   ;;  %v1678_v54 = vld [vmem:[#allocation5 + $0x214] ss:$24 sps:$4 sm:$0xff]  }
  0x7a   : > { %1014 = vmatpush1.bf16.msra.mxu0 %v1632_v17  ;;  %1055 = vmatpush1.bf16.msra.mxu1 %v1635_v18  ;;  %v1677_v53 = vld [vmem:[#allocation5 + $0x1e8] ss:$24 sps:$4 sm:$0xff]   ;;  %v1681_v56 = vld [vmem:[#allocation5 + $0x21c] ss:$24 sps:$4 sm:$0xff]   ;;  %v1683_v57 = vld [vmem:[#allocation5 + $0x218] ss:$24 sps:$4 sm:$0xff]  }
  0x7b   : > { %1015 = vmatprep.subr.bf16.mxu0 %v1636_v19  ;;  %1056 = vmatprep.subr.bf16.mxu1 %v1639_v20  ;;  %v1680_v55 = vld [vmem:[#allocation5 + $0x210] ss:$24 sps:$4 sm:$0xff]   ;;  %v1684_v58 = vld [vmem:[#allocation5 + $0x244] ss:$24 sps:$4 sm:$0xff]   ;;  %v1686_v59 = vld [vmem:[#allocation5 + $0x240] ss:$24 sps:$4 sm:$0xff]  }
  0x7c   : > { %v1687_v60 = vld [vmem:[#allocation5 + $0x24c] ss:$24 sps:$4 sm:$0xff]   ;;  %v1689_v61 = vld [vmem:[#allocation5 + $0x248] ss:$24 sps:$4 sm:$0xff]   ;;  %v1693_v63 = vld [vmem:[#allocation5 + $0x27c] ss:$24 sps:$4 sm:$0xff]  }
  0x7d   : > { %v1690_v62 = vld [vmem:[#allocation5 + $0x274] ss:$24 sps:$4 sm:$0xff]   ;;  %v1696_v2 = vld [vmem:[#allocation5 + $0x2a4] ss:$24 sps:$4 sm:$0xff]   ;;  %v1698_v4 = vld [vmem:[#allocation5 + $0x2a0] ss:$24 sps:$4 sm:$0xff]  }
  0x7e   : > { %1016 = vmatpush1.bf16.msra.mxu0 %v1638_v21  ;;  %1057 = vmatpush1.bf16.msra.mxu1 %v1641_v22  ;;  %v1699_v3 = vld [vmem:[#allocation5 + $0x2ac] ss:$24 sps:$4 sm:$0xff]   ;;  %v1701_v5 = vld [vmem:[#allocation5 + $0x2a8] ss:$24 sps:$4 sm:$0xff]   ;;  %v1705_v7 = vld [vmem:[#allocation5 + $0x2dc] ss:$24 sps:$4 sm:$0xff]  }
  0x7f   : > { %1017 = vmatprep.subr.bf16.mxu0 %v1642_v23  ;;  %1058 = vmatprep.subr.bf16.mxu1 %v1645_v24  ;;  %v1702_v6 = vld [vmem:[#allocation5 + $0x2d4] ss:$24 sps:$4 sm:$0xff]   ;;  %v1704_v8 = vld [vmem:[#allocation5 + $0x2d0] ss:$24 sps:$4 sm:$0xff]   ;;  %v2220_v15 = vshrl.u32 %v372_v13, 7  ;;  %s2255_s22 = sshll.u32 %s2192_s19, 3 }
  0x80   : > { %v1707_v9 = vld [vmem:[#allocation5 + $0x2d8] ss:$24 sps:$4 sm:$0xff]   ;;  %v1710_v10 = vld [vmem:[#allocation5 + $0x14] ss:$24 sps:$4 sm:$0xff]   ;;  %v352_v18 = vld [vmem:[%s2390_s1] sm:$0x3] }
  0x81   : > { %v2223_v16 = vsub.s32 1, %v2220_v15  ;;  %v2226_v17 = vsub.s32 0, %v2220_v15  ;;  %v353_v19 = vld [vmem:[%s2391_s2] sm:$0x3]  ;;  %s1162_s28 = sand.u32 1, %s2068_s9   ;;  %s2264_s23 = sshll.u32 %s1180_s5, 6 }
  0x82   : > { %1018 = vmatpush1.bf16.msra.mxu0 %v1644_v25  ;;  %1059 = vmatpush1.bf16.msra.mxu1 %v1647_v26  ;;  %s342_s27 = scalar_lea.vmem [#allocation8], %s2255_s22  ;;  %s335_s17 = scalar_lea.vmem [#allocation7], %s2255_s22 }
  0x83   : > { %1019 = vmatprep.subr.bf16.mxu0 %v1648_v27  ;;  %1060 = vmatprep.subr.bf16.mxu1 %v1651_v28  ;;  %v379_v20 = vrot.slane %v352_v18, %v2223_v16  ;;  %v375_v21 = vrot.slane %v352_v18, %v2226_v17  ;;  %v392_v24 = vrot.slane %v353_v19, %v2223_v16  ;;  %s1200_s15 = sshll.u32 %s342_s27, 4  ;;  %s1184_s18 = sshll.u32 %s335_s17, 4  ;;  %s2274_s15 = int_to_ptr.vmem [resolvable:$true] %s1200_s15  ;;  %s2282_s18 = int_to_ptr.vmem [resolvable:$true] %s1184_s18 }
  0x84   : > { %v388_v26 = vrot.slane %v353_v19, %v2226_v17  ;;  %s2431_s10 = sld [smem:[#allocation22_spill]]  ;;  %s2432_s12 = sld [smem:[#allocation21_spill]] }
  0x85   : > { %s2284_s14 = scalar_lea.sflag [#allocation9], %s1162_s28  ;;  %s1816_s3 = scalar_lea.vmem %s2274_s15, 128 }
  0x86   : > { %1020 = vmatpush1.bf16.msra.mxu0 %v1650_v29  ;;  %1061 = vmatpush1.bf16.msra.mxu1 %v1653_v30  ;;  %p1817_p8 = scmp.ne.s32.totalorder %s2274_s15, %s1816_s3  ;;  %s1984_s21 = smov [#allocation8]  }
  0x87   : > { %1021 = vmatprep.subr.bf16.mxu0 %v1654_v31  ;;  %1062 = vmatprep.subr.bf16.mxu1 %v1657_v32  ;;  %v1708_v32 = vld [vmem:[#allocation5 + $0x10] ss:$24 sps:$4 sm:$0xff]   ;;  %s1820_s29 = sshll.u32 %s1984_s21, 4  ;;  %s1821_s29 = int_to_ptr.vmem [resolvable:$false] %s1820_s29 }
  0x88   : > { %p1818_p10 = pnand %p1817_p8, %p2130_p11  ;;  %s1822_s5 = scalar_lea.vmem %s1821_s29, 256 }
  0x89   : > { %p1823_p13 = scmp.lt.s32.totalorder %s2274_s15, %s1821_s29  ;;  %p1824_p3 = scmp.lt.s32.totalorder %s1822_s5, %s1816_s3 }
  0x8a   : > { %1022 = vmatpush1.bf16.msra.mxu0 %v1656_v33  ;;  %1063 = vmatpush1.bf16.msra.mxu1 %v1659_v34  ;;  %v1713_v34 = vld [vmem:[#allocation5 + $0x44] ss:$24 sps:$4 sm:$0xff]   ;;  %s2272_s7 = scalar_lea.hbm %s2431_s10, %s2264_s23  ;;  %s2280_s13 = scalar_lea.hbm %s2432_s12, %s2264_s23 }
  0x8b   : > { %1023 = vmatprep.subr.bf16.mxu0 %v1660_v35  ;;  %1064 = vmatprep.subr.bf16.mxu1 %v1663_v36  ;;  %v1711_v35 = vld [vmem:[#allocation5 + $0x40] ss:$24 sps:$4 sm:$0xff]   ;;  %v1716_v36 = vld [vmem:[#allocation5 + $0x74] ss:$24 sps:$4 sm:$0xff]   ;;  %p1819_p12 = pneg %p1818_p10  ;;  %p1825_p7 = por %p1824_p3, %p1823_p13 }
  0x8d   : > { %p1826_p1 = pnand %p1825_p7, %p1819_p12 }
  0x8e   : > { %1024 = vmatpush1.bf16.msra.mxu0 %v1662_v37  ;;  %1065 = vmatpush1.bf16.msra.mxu1 %v1665_v38  ;;  %v1714_v37 = vld [vmem:[#allocation5 + $0x70] ss:$24 sps:$4 sm:$0xff]   ;;  %v1719_v38 = vld [vmem:[#allocation5 + $0xa4] ss:$24 sps:$4 sm:$0xff]  }
  0x8f   : > { %1025 = vmatprep.subr.bf16.mxu0 %v1666_v39  ;;  %1066 = vmatprep.subr.bf16.mxu1 %v1669_v40  ;;  %v1717_v39 = vld [vmem:[#allocation5 + $0xa0] ss:$24 sps:$4 sm:$0xff]   ;;  %v1722_v40 = vld [vmem:[#allocation5 + $0xd4] ss:$24 sps:$4 sm:$0xff]  }
  0x92   : > { %1026 = vmatpush1.bf16.msra.mxu0 %v1668_v41  ;;  %1067 = vmatpush1.bf16.msra.mxu1 %v1671_v42  ;;  %v1720_v41 = vld [vmem:[#allocation5 + $0xd0] ss:$24 sps:$4 sm:$0xff]   ;;  %v1725_v42 = vld [vmem:[#allocation5 + $0x104] ss:$24 sps:$4 sm:$0xff]  }
  0x93   : > { %1027 = vmatprep.subr.bf16.mxu0 %v1672_v43  ;;  %1068 = vmatprep.subr.bf16.mxu1 %v1675_v52  ;;  %v1723_v43 = vld [vmem:[#allocation5 + $0x100] ss:$24 sps:$4 sm:$0xff]   ;;  %v1740_v52 = vld [vmem:[#allocation5 + $0x1f4] ss:$24 sps:$4 sm:$0xff]  }
  0x96   : > { %1028 = vmatpush1.bf16.msra.mxu0 %v1674_v51  ;;  %1069 = vmatpush1.bf16.msra.mxu1 %v1677_v53  ;;  %v1735_v51 = vld [vmem:[#allocation5 + $0x1c0] ss:$24 sps:$4 sm:$0xff]   ;;  %v1738_v53 = vld [vmem:[#allocation5 + $0x1f0] ss:$24 sps:$4 sm:$0xff]  }
  0x97   : > { %1029 = vmatprep.subr.bf16.mxu0 %v1678_v54  ;;  %1070 = vmatprep.subr.bf16.mxu1 %v1681_v56  ;;  %v1743_v54 = vld [vmem:[#allocation5 + $0x224] ss:$24 sps:$4 sm:$0xff]   ;;  %v1746_v56 = vld [vmem:[#allocation5 + $0x254] ss:$24 sps:$4 sm:$0xff]  }
  0x9a   : > { %1030 = vmatpush1.bf16.msra.mxu0 %v1680_v55  ;;  %1071 = vmatpush1.bf16.msra.mxu1 %v1683_v57  ;;  %v1741_v55 = vld [vmem:[#allocation5 + $0x220] ss:$24 sps:$4 sm:$0xff]   ;;  %v1744_v57 = vld [vmem:[#allocation5 + $0x250] ss:$24 sps:$4 sm:$0xff]  }
  0x9b   : > { %1031 = vmatprep.subr.bf16.mxu0 %v1684_v58  ;;  %1072 = vmatprep.subr.bf16.mxu1 %v1687_v60  ;;  %v1749_v58 = vld [vmem:[#allocation5 + $0x284] ss:$24 sps:$4 sm:$0xff]   ;;  %v1752_v60 = vld [vmem:[#allocation5 + $0x2b4] ss:$24 sps:$4 sm:$0xff]  }
  0x9e   : > { %1032 = vmatpush1.bf16.msra.mxu0 %v1686_v59  ;;  %1073 = vmatpush1.bf16.msra.mxu1 %v1689_v61  ;;  %v1747_v59 = vld [vmem:[#allocation5 + $0x280] ss:$24 sps:$4 sm:$0xff]   ;;  %v1750_v61 = vld [vmem:[#allocation5 + $0x2b0] ss:$24 sps:$4 sm:$0xff]  }
  0x9f   : > { %1033 = vmatprep.subr.bf16.mxu0 %v1690_v62  ;;  %1074 = vmatprep.subr.bf16.mxu1 %v1693_v63  ;;  %v1755_v62 = vld [vmem:[#allocation5 + $0x2e4] ss:$24 sps:$4 sm:$0xff]   ;;  %v1753_v63 = vld [vmem:[#allocation5 + $0x2e0] ss:$24 sps:$4 sm:$0xff]  }
  0xfa   : > { %v356_v44 = vpop.xlane.xlu0 %355 }
  0xfb   : > { %v358_v45 = vmul.f32 0.00390625, %v356_v44  ;;  %v1728_v44 = vld [vmem:[#allocation5 + $0x134] ss:$24 sps:$4 sm:$0xff]  }
  0xfd   : > { %v2211_v46 = vsub.f32 %v2204_v0, %v358_v45  ;;  %v2214_v47 = vsub.f32 %v2206_v1, %v358_v45  ;;  %v1692_v0 = vld [vmem:[#allocation5 + $0x270] ss:$24 sps:$4 sm:$0xff]  }
  0xfe   : > { %v1695_v1 = vld [vmem:[#allocation5 + $0x278] ss:$24 sps:$4 sm:$0xff]   ;;  %1034 = vmatpush1.bf16.msra.mxu0 %v1692_v0  ;;  %v507_v0 = vsub.s32 2, %v2220_v15 }
  0xff   : > { %v361_v48 = vmul.f32 %v2211_v46, %v2211_v46  ;;  %v362_v49 = vmul.f32 %v2214_v47, %v2214_v47  ;;  %1075 = vmatpush1.bf16.msra.mxu1 %v1695_v1  ;;  %1035 = vmatprep.subr.bf16.mxu0 %v1696_v2  ;;  %v1726_v45 = vld [vmem:[#allocation5 + $0x130] ss:$24 sps:$4 sm:$0xff]   ;;  %v2250_v1 = vld [vmem:[%s2393_s4] sm:$0x3f]  ;;  %v511_v2 = vsub.s32 3, %v2220_v15 }
 0x100   : > { %1076 = vmatprep.subr.bf16.mxu1 %v1699_v3  ;;  %v500_v3 = vrot.slane %v2250_v1, %v2226_v17 }
 0x101   : > { %v363_v50 = vadd.f32 %v362_v49, %v361_v48  ;;  %v1734_v48 = vld [vmem:[#allocation5 + $0x194] ss:$24 sps:$4 sm:$0xff]   ;;  %v1732_v49 = vld [vmem:[#allocation5 + $0x190] ss:$24 sps:$4 sm:$0xff]  }
 0x102   : > { %1036 = vmatpush1.bf16.msra.mxu0 %v1698_v4  ;;  %v508_v4 = vrot.slane %v2250_v1, %v507_v0 }
 0x103   : > { %364 = vadd.xlane.f32.xlu0 %v363_v50  ;;  %1077 = vmatpush1.bf16.msra.mxu1 %v1701_v5  ;;  %v1737_v50 = vld [vmem:[#allocation5 + $0x1c4] ss:$24 sps:$4 sm:$0xff]   ;;  %v504_v5 = vrot.slane %v2250_v1, %v2223_v16 }
 0x104   : > { %1037 = vmatprep.subr.bf16.mxu0 %v1702_v6  ;;  %1078 = vmatprep.subr.bf16.mxu1 %v1705_v7  ;;  %v512_v6 = vrot.slane %v2250_v1, %v511_v2 }
 0x106   : > { %1038 = vmatpush1.bf16.msra.mxu0 %v1704_v8 }
 0x107   : > { %1079 = vmatpush1.bf16.msra.mxu1 %v1707_v9  ;;  %1089 = vmatprep.subr.bf16.mxu0 %v1710_v10 }
 0x190   : > { %v365_v11 = vpop.xlane.xlu0 %364 }
 0x191   : > { %v366_v12 = vmul.f32 0.00390625, %v365_v11 }
 0x193   : > { %v367_v14 = vadd.f32 1e-05, %v366_v12 }
 0x195   : > { %1756 = vrsqrt.f32 %v367_v14 }
 0x19f   : > { %v1757_v22 = vpop.eup %1756 }
 0x1a0   : > { %v370_v23 = vmul.f32 %v1757_v22, %v2214_v47  ;;  %v369_v25 = vmul.f32 %v1757_v22, %v2211_v46  ;;  %v1731_v46 = vld [vmem:[#allocation5 + $0x164] ss:$24 sps:$4 sm:$0xff]   ;;  %v1729_v47 = vld [vmem:[#allocation5 + $0x160] ss:$24 sps:$4 sm:$0xff]  }
 0x1a2   : > { %v383_v27 = vmul.f32 %v379_v20, %v370_v23  ;;  %v382_v28 = vmul.f32 %v375_v21, %v369_v25 }
 0x1a4   : > { %v396_v29 = vadd.f32 %v392_v24, %v383_v27  ;;  %v395_v30 = vadd.f32 %v388_v26, %v382_v28 }
 0x1a6   : > { %v398_v31 = vpack.c.bf16 %v396_v29, %v396_v29  ;;  %v2240_v33 = vpack.c.bf16 %v395_v30, %v395_v30 }
 0x1a8   : > { %1039 = vmatprep.mubr.bf16.mxu0 %v398_v31  ;;  %1080 = vmatprep.mubr.bf16.mxu1 %v398_v31 }
 0x1a9   : > { %1040 = vmatmul.mubr.bf16.vlgmr.msra.gmra.mrb[0].mxu0 %v2240_v33  ;;  %1081 = vmatmul.mubr.bf16.vlgmr.msra.gmra.mrb[0].mxu1 %v2240_v33 }
 0x1aa   : > { %1090 = vmatpush1.bf16.msra.mxu0 %v1708_v32  ;;  %1121 = vmatprep.mubr.bf16.mxu0 %v398_v31 }
 0x1ab   : > { %1091 = vmatprep.subr.bf16.mxu0 %v1713_v34 }
 0x1ae   : > { %1092 = vmatpush1.bf16.msra.mxu0 %v1711_v35 }
 0x1af   : > { %1093 = vmatprep.subr.bf16.mxu0 %v1716_v36 }
 0x1b2   : > { %1094 = vmatpush1.bf16.msra.mxu0 %v1714_v37 }
 0x1b3   : > { %1095 = vmatprep.subr.bf16.mxu0 %v1719_v38 }
 0x1b6   : > { %1096 = vmatpush1.bf16.msra.mxu0 %v1717_v39 }
 0x1b7   : > { %1097 = vmatprep.subr.bf16.mxu0 %v1722_v40 }
 0x1ba   : > { %1098 = vmatpush1.bf16.msra.mxu0 %v1720_v41 }
 0x1bb   : > { %1099 = vmatprep.subr.bf16.mxu0 %v1725_v42 }
 0x1be   : > { %1100 = vmatpush1.bf16.msra.mxu0 %v1723_v43 }
 0x1bf   : > { %1101 = vmatprep.subr.bf16.mxu0 %v1728_v44 }
 0x1c2   : > { %1102 = vmatpush1.bf16.msra.mxu0 %v1726_v45 }
 0x1c3   : > { %1103 = vmatprep.subr.bf16.mxu0 %v1731_v46 }
 0x1c6   : > { %1104 = vmatpush1.bf16.msra.mxu0 %v1729_v47 }
 0x1c7   : > { %1105 = vmatprep.subr.bf16.mxu0 %v1734_v48 }
 0x1ca   : > { %1106 = vmatpush1.bf16.msra.mxu0 %v1732_v49 }
 0x1cb   : > { %1107 = vmatprep.subr.bf16.mxu0 %v1737_v50 }
 0x1ce   : > { %1108 = vmatpush1.bf16.msra.mxu0 %v1735_v51 }
 0x1cf   : > { %1109 = vmatprep.subr.bf16.mxu0 %v1740_v52 }
 0x1d2   : > { %1110 = vmatpush1.bf16.msra.mxu0 %v1738_v53 }
 0x1d3   : > { %1111 = vmatprep.subr.bf16.mxu0 %v1743_v54 }
 0x1d6   : > { %1112 = vmatpush1.bf16.msra.mxu0 %v1741_v55 }
 0x1d7   : > { %1113 = vmatprep.subr.bf16.mxu0 %v1746_v56 }
 0x1da   : > { %1114 = vmatpush1.bf16.msra.mxu0 %v1744_v57 }
 0x1db   : > { %1115 = vmatprep.subr.bf16.mxu0 %v1749_v58 }
 0x1de   : > { %1116 = vmatpush1.bf16.msra.mxu0 %v1747_v59 }
 0x1df   : > { %1117 = vmatprep.subr.bf16.mxu0 %v1752_v60 }
 0x1e2   : > { %1118 = vmatpush1.bf16.msra.mxu0 %v1750_v61 }
 0x1e3   : > { %1119 = vmatprep.subr.bf16.mxu0 %v1755_v62 }
 0x1e6   : > { %1120 = vmatpush1.bf16.msra.mxu0 %v1753_v63 }
 0x1e9   : > { %1122 = vmatmul.mubr.bf16.vlgmr.msra.gmra.mrb[4].mxu0 %v2240_v33 }
 0x27c   : > { %v1041_v7 = vpop.f32.mrb[0].mxu0  ;;  %v1082_v8 = vpop.f32.mrb[0].mxu1 }
 0x27d   : > { %v1042_v9 = vadd.f32 %v1041_v7, %v500_v3  ;;  %v1083_v10 = vadd.f32 %v1082_v8, %v508_v4  ;;  %v1043_v11 = vpop.f32.mrb[1].mxu0  ;;  %v1084_v12 = vpop.f32.mrb[1].mxu1 }
 0x27e   : > { %v1044_v13 = vadd.f32 %v1043_v11, %v504_v5  ;;  %v1085_v14 = vadd.f32 %v1084_v12, %v512_v6  ;;  %v1045_v17 = vpop.f32.mrb[2].mxu0  ;;  %v1086_v16 = vpop.f32.mrb[2].mxu1 }
 0x27f   : > { %v1046_v18 = vpop.f32.mrb[3].mxu0  ;;  %v1087_v19 = vpop.f32.mrb[3].mxu1 }
 0x280   : > { %v1504_v20 = vpack.c.bf16 %v1044_v13, %v1042_v9  ;;  %v1505_v21 = vpack.c.bf16 %v1085_v14, %v1083_v10 }
 0x282   : > { %1147 = vst [vmem:[%s342_s27] sm:$0xff] %v1505_v21  ;;  %1138 = vst [vmem:[%s335_s17] sm:$0xff] %v1504_v20 }
 0x283   : > { %1829 = shalt.err (!%p1826_p1)
}
 0x284   : > { %s1830_s28 = scalar_lea.hbm %s2272_s7, 128  ;;  %s1834_s9 = scalar_lea.hbm %s2431_s10, 768 }
 0x285   : > { %p1831_p2 = scmp.ne.s32.totalorder %s2272_s7, %s1830_s28  ;;  %p1835_p5 = scmp.lt.u32.totalorder %s2272_s7, %s2431_s10 }
 0x286   : > { %p1836_p6 = scmp.lt.u32.totalorder %s1834_s9, %s1830_s28  ;;  %p1838_p8 = scmp.lt.u32.totalorder %s1830_s28, %s2272_s7 }
 0x287   : > { %p1832_p4 = pnand %p1831_p2, %p2130_p11 }
 0x288   : > { %p1837_p0 = por %p1836_p6, %p1835_p5 }
 0x289   : > { %p1833_p9 = pneg %p1832_p4 }
 0x28a   : > { %p1839_p10 = por %p1838_p8, %p1837_p0 }
 0x28c   : > { %p1840_p12 = pnand %p1839_p10, %p1833_p9 }
 0x28e   : > { %1843 = shalt.err (!%p1840_p12)
}
 0x28f   : > { %1518 = dma.vmem_to_hbm [thread:$0]  (%p2130_p11), %s2274_s15, 128, %s2272_s7, %s2284_s14  }
 0x290   : > { %s1158_s11 = scalar_lea.sflag [#allocation4], %s2192_s19  ;;  %s1844_s3 = scalar_lea.vmem %s2282_s18, 128 }
 0x291   : > { %p1845_p13 = scmp.ne.s32.totalorder %s2282_s18, %s1844_s3  ;;  %s1985_s21 = smov [#allocation7]  }
 0x292   : > { %s1848_s29 = sshll.u32 %s1985_s21, 4  ;;  %s1849_s29 = int_to_ptr.vmem [resolvable:$false] %s1848_s29 }
 0x293   : > { %p1846_p3 = pnand %p1845_p13, %p2130_p11  ;;  %s1850_s5 = scalar_lea.vmem %s1849_s29, 256 }
 0x294   : > { %p1851_p1 = scmp.lt.s32.totalorder %s2282_s18, %s1849_s29  ;;  %p1852_p2 = scmp.lt.s32.totalorder %s1850_s5, %s1844_s3 }
 0x295   : > { %p1847_p7 = pneg %p1846_p3 }
 0x296   : > { %p1853_p4 = por %p1852_p2, %p1851_p1 }
 0x298   : > { %p1854_p9 = pnand %p1853_p4, %p1847_p7 }
 0x29a   : > { %1857 = shalt.err (!%p1854_p9)
}
 0x29b   : > { %s1858_s19 = scalar_lea.hbm %s2280_s13, 128  ;;  %s1862_s28 = scalar_lea.hbm %s2432_s12, 768 }
 0x29c   : > { %p1859_p5 = scmp.ne.s32.totalorder %s2280_s13, %s1858_s19  ;;  %p1863_p8 = scmp.lt.u32.totalorder %s2280_s13, %s2432_s12 }
 0x29d   : > { %p1864_p10 = scmp.lt.u32.totalorder %s1862_s28, %s1858_s19  ;;  %p1866_p13 = scmp.lt.u32.totalorder %s1858_s19, %s2280_s13 }
 0x29e   : > { %p1860_p6 = pnand %p1859_p5, %p2130_p11 }
 0x29f   : > { %p1865_p12 = por %p1864_p10, %p1863_p8 }
 0x2a0   : > { %p1861_p0 = pneg %p1860_p6 }
 0x2a1   : > { %p1867_p3 = por %p1866_p13, %p1865_p12 }
 0x2a3   : > { %p1868_p7 = pnand %p1867_p3, %p1861_p0 }
 0x2a5   : > { %1871 = shalt.err (!%p1868_p7)
}
 0x2a6   : > { %1517 = dma.vmem_to_hbm [thread:$0]  (%p2130_p11), %s2282_s18, 128, %s2280_s13, %s1158_s11   ;;  %v515_v22 = vsub.s32 4, %v2220_v15  ;;  %v519_v23 = vsub.s32 5, %v2220_v15 }
 0x2a7   : > { %s349_s9 = scalar_lea.vmem [#allocation10], %s2255_s22  ;;  %s2433_s13 = sld [smem:[#allocation23_spill]] }
 0x2a8   : > { %v516_v24 = vrot.slane %v2250_v1, %v515_v22  ;;  %v520_v25 = vrot.slane %v2250_v1, %v519_v23  ;;  %s1216_s20 = sshll.u32 %s349_s9, 4  ;;  %s1986_s21 = smov [#allocation10]   ;;  %s1217_s20 = int_to_ptr.vmem [resolvable:$true] %s1216_s20 }
 0x2a9   : > { %s1872_s3 = scalar_lea.vmem %s1217_s20, 128  ;;  %s1876_s29 = sshll.u32 %s1986_s21, 4  ;;  %s1877_s29 = int_to_ptr.vmem [resolvable:$false] %s1876_s29 }
 0x2aa   : > { %p1873_p1 = scmp.ne.s32.totalorder %s1217_s20, %s1872_s3  ;;  %s1878_s22 = scalar_lea.vmem %s1877_s29, 256 }
 0x2ab   : > { %p1879_p9 = scmp.lt.s32.totalorder %s1217_s20, %s1877_s29  ;;  %p1880_p5 = scmp.lt.s32.totalorder %s1878_s22, %s1872_s3 }
 0x2ac   : > { %p1874_p2 = pnand %p1873_p1, %p2130_p11 }
 0x2ad   : > { %s2339_s11 = scalar_lea.hbm %s2433_s13, %s2264_s23  ;;  %p1881_p6 = por %p1880_p5, %p1879_p9 }
 0x2ae   : > { %p1875_p4 = pneg %p1874_p2 }
 0x2b0   : > { %p1882_p0 = pnand %p1881_p6, %p1875_p4 }
 0x2bc   : > { %v1123_v26 = vpop.f32.mrb[4].mxu0 }
 0x2bd   : > { %v1124_v27 = vadd.f32 %v1123_v26, %v516_v24  ;;  %v1125_v28 = vpop.f32.mrb[5].mxu0 }
 0x2be   : > { %v1126_v29 = vadd.f32 %v1125_v28, %v520_v25  ;;  %v1127_v30 = vpop.f32.mrb[6].mxu0 }
 0x2bf   : > { %v1128_v31 = vpop.f32.mrb[7].mxu0 }
 0x2c0   : > { %v1506_v32 = vpack.c.bf16 %v1126_v29, %v1124_v27 }
 0x2c2   : > { %1156 = vst [vmem:[%s349_s9] sm:$0xff] %v1506_v32 }
 0x2c3   : > { %1885 = shalt.err (!%p1882_p0)
}
 0x2c4   : > { %s1886_s23 = scalar_lea.hbm %s2339_s11, 128  ;;  %s1890_s15 = scalar_lea.hbm %s2433_s13, 768 }
 0x2c5   : > { %p1887_p8 = scmp.ne.s32.totalorder %s2339_s11, %s1886_s23  ;;  %p1891_p13 = scmp.lt.u32.totalorder %s2339_s11, %s2433_s13 }
 0x2c6   : > { %p1892_p3 = scmp.lt.u32.totalorder %s1890_s15, %s1886_s23  ;;  %p1894_p1 = scmp.lt.u32.totalorder %s1886_s23, %s2339_s11 }
 0x2c7   : > { %p1888_p10 = pnand %p1887_p8, %p2130_p11 }
 0x2c8   : > { %p1893_p7 = por %p1892_p3, %p1891_p13 }
 0x2c9   : > { %p1889_p12 = pneg %p1888_p10 }
 0x2ca   : > { %p1895_p2 = por %p1894_p1, %p1893_p7 }
 0x2cc   : > { %p1896_p4 = pnand %p1895_p2, %p1889_p12 }
 0x2ce   : > { %1899 = shalt.err (!%p1896_p4)
}
 0x2cf   : > { %1519 = dma.vmem_to_hbm [thread:$0]  (%p2130_p11), %s1217_s20, 128, %s2339_s11, %s2284_s14  }
 0x2d0 PF: > { %s2434_s27 = sld [smem:[#allocation15_spill]]  ;;  %s2435_s17 = sld [smem:[#allocation17_spill]] }
 0x2d1   : > { %p1544_p9 = scmp.ge.s32.totalorder %s1978_s8, 2 }
 0x2d6   : > { %s1228_s9 = sand.u32 1, %s2434_s27   ;;  %p2436_p5 = scmp.ne.s32.totalorder %s2435_s17, 0 }
 0x2d7   : > { %s1229_s6 = scalar_lea.sflag [#allocation4], %s1228_s9 }
 0x2d8   : > { %p1532_p6 = pnand %p1544_p9, %p2436_p5 }
 0x2da   : > { %1941 = dma.done.wait (!%p1532_p6), %s1229_s6, 128  }
 0x2db   : > { %1943 = vsyncadd (!%p1532_p6), %s1229_s6, 4294967168  ;;  %s2437_s18 = sadd.s32 4294967294, %s1978_s8  }
 0x2dc   : > { %s1237_s3 = sand.u32 1, %s2437_s18  }
 0x2dd   : > { %s1238_s21 = scalar_lea.sflag [#allocation9], %s1237_s3 }
 0x2de   : > { %1945 = dma.done.wait (!%p1532_p6), %s1238_s21, 256  }
 0x2df   : > { %1947 = vsyncadd (!%p1532_p6), %s1238_s21, 4294967040  ;;  %s28_s8 = sadd.s32 1, %s1978_s8   ;;  %s2438_s16 = smov %s2147_s24 }
 0x2e0   : > { %p25_p11 = scmp.ge.s32.totalorder %s28_s8, 8   ;;  %s2439_s27 = sld [smem:[#allocation16_spill]] }
 0x2e1   : > { %s2440_s29 = sld [smem:[#allocation18_spill]]  ;;  %s2441_s14 = sld [smem:[#allocation19_spill]] }
 0x2e2   : > { %s2442_s24 = smov %s1954_s25  ;;  %s2443_s25 = smov %s1958_s26 }
 0x2e3   : > { %s2444_s26 = smov %s2438_s16  ;;  %s2445_s28 = smov %s1974_s30 }
 0x2e4   :  { %27 = sbr.rel (!%p25_p11) target bundleno = 15 (0xf), region = 121 }
 0x2e7   : > { %s2446_s30 = smov %s2441_s14 }
 0x2eb   :  { %1252 = vsyncpa [#allocation3], 1 }
 0x2ec   :  { %1254 = vsyncpa [#allocation3 + $0x1], 1 }
 0x2ed   :  { %1255 = vsyncpa [#allocation6], 1 }
 0x2ee   :  { %1256 = vsyncpa [#allocation4], 1 }
 0x2ef   :  { %1258 = vsyncpa [#allocation4 + $0x1], 1 }
 0x2f0   :  { %1259 = vsyncpa [#allocation9], 1 }
 0x2f1   :  { %1261 = vsyncpa [#allocation9 + $0x1], 1 }

</bundles_post_ra>
